<compile_context>
chip_gen: v6e
topology: v6e:2x2x1
jax: 0.10.0
libtpu: 0.0.40
codegen_flags: <defaults>
</compile_context>

<pallas_src>
import functools

import jax
import jax.numpy as jnp
from jax import lax
from jax.experimental import pallas as pl
from jax.experimental.pallas import tpu as pltpu

# Set to jnp.bfloat16 on v6e/v7x for higher MXU throughput + halved DMA bytes.
MXU_DTYPE = jnp.float32

_PAR = pltpu.CompilerParams(dimension_semantics=("parallel",))


def _pick_row_tile(m, target):
    """Largest divisor of m that is <= target and a multiple of 8 (else m itself)."""
    for d in range(min(m, target), 0, -1):
        if m % d == 0 and d % 8 == 0:
            return d
    return m


# ----------------------------------------------------------------------------- kernels

def _conv_transpose_kernel(x_ref, w_ref, b_ref, o_ref):
    # x: (TB, W, Cin)    rows are flattened (n, h)
    # w: (2, Cin, 2*Cout)   per-di weight, (dj, co) packed on lanes
    # b: (2, 1, 2*Cout)
    # o: (TB, 2, W, 2*Cout) -> wrapper reshapes (metadata only) to (N, 2H, 2W, Cout)
    tb, w, cin = x_ref.shape
    c2 = w_ref.shape[-1]
    x2 = x_ref[...].reshape(tb * w, cin)
    for di in range(2):
        y = jnp.dot(x2, w_ref[di], preferred_element_type=jnp.float32) + b_ref[di]
        o_ref[:, di:di + 1, :, :] = y.reshape(tb, 1, w, c2)


def _im2col_into(col_ref, pad_ref, h, w, c):
    # col[(y, x), (dh*3+dw)*c + ci] = pad[y+dh, x+dw, ci]
    t = 0
    for dh in range(3):
        for dw in range(3):
            col_ref[:, t * c:(t + 1) * c] = (
                pad_ref[dh:dh + h, dw:dw + w, :].reshape(h * w, c))
            t += 1


def _conv_concat_stats_kernel(*refs, n_src):
    # refs: src_0..src_{n_src-1} (1,H,W,Ck), w (9*C, Cout),
    #       o (H*W, Cout), sum (1,1,Cout), ssq (1,1,Cout), pad scratch, im2col scratch
    src_refs = refs[:n_src]
    w_ref = refs[n_src]
    o_ref, sum_ref, ssq_ref, pad_ref, col_ref = refs[n_src + 1:]
    hp, wp, c = pad_ref.shape
    h, w = hp - 2, wp - 2
    cout = o_ref.shape[-1]

    # fused zero padding + channel-concat of the sources into the padded interior
    pad_ref[...] = jnp.zeros_like(pad_ref)
    c0 = 0
    for s_ref in src_refs:
        cs = s_ref.shape[-1]
        pad_ref[1:h + 1, 1:w + 1, c0:c0 + cs] = s_ref[0].astype(pad_ref.dtype)
        c0 += cs

    _im2col_into(col_ref, pad_ref, h, w, c)
    acc = jnp.dot(col_ref[...], w_ref[...], preferred_element_type=jnp.float32)
    o_ref[...] = acc
    sum_ref[...] = jnp.sum(acc, axis=0, keepdims=True).reshape(1, 1, cout)
    ssq_ref[...] = jnp.sum(acc * acc, axis=0, keepdims=True).reshape(1, 1, cout)


def _bn_silu_conv_stats_kernel(x_ref, sc_ref, sh_ref, w_ref,
                               o_ref, sum_ref, ssq_ref, pad_ref, col_ref):
    # Applies previous ConvBlock's BN+SiLU in-kernel, then conv3x3 + partial stats.
    hp, wp, c = pad_ref.shape
    h, w = hp - 2, wp - 2
    cout = o_ref.shape[-1]

    a = x_ref[...] * sc_ref[...] + sh_ref[...]
    a = a * jax.nn.sigmoid(a)                                  # SiLU

    pad_ref[...] = jnp.zeros_like(pad_ref)
    pad_ref[1:h + 1, 1:w + 1, :] = a.reshape(h, w, c).astype(pad_ref.dtype)

    _im2col_into(col_ref, pad_ref, h, w, c)
    acc = jnp.dot(col_ref[...], w_ref[...], preferred_element_type=jnp.float32)
    o_ref[...] = acc
    sum_ref[...] = jnp.sum(acc, axis=0, keepdims=True).reshape(1, 1, cout)
    ssq_ref[...] = jnp.sum(acc * acc, axis=0, keepdims=True).reshape(1, 1, cout)


def _bn_silu_kernel(x_ref, sc_ref, sh_ref, o_ref):
    y = x_ref[...] * sc_ref[...] + sh_ref[...]
    o_ref[...] = y * jax.nn.sigmoid(y)


# ----------------------------------------------------------------------------- wrappers

def conv_transpose_2x2(x_nhwc, wt, bt, mxu_dtype=MXU_DTYPE):
    """PyTorch ConvTranspose2d(k=2, s=2, p=0). wt: (Cin, Cout, 2, 2), bt: (Cout,)."""
    n, h, w, cin = x_nhwc.shape
    cout = wt.shape[1]
    nh = n * h
    x3 = x_nhwc.reshape(nh, w, cin).astype(mxu_dtype)                       # metadata
    wk = jnp.transpose(wt, (2, 0, 3, 1)).reshape(2, cin, 2 * cout).astype(mxu_dtype)
    bk = jnp.tile(bt, 4).reshape(2, 1, 2 * cout).astype(jnp.float32)
    tb = _pick_row_tile(nh, 256)
    out = pl.pallas_call(
        _conv_transpose_kernel,
        grid=(nh // tb,),
        in_specs=[pl.BlockSpec((tb, w, cin), lambda b: (b, 0, 0)),
                  pl.BlockSpec((2, cin, 2 * cout), lambda b: (0, 0, 0)),
                  pl.BlockSpec((2, 1, 2 * cout), lambda b: (0, 0, 0))],
        out_specs=pl.BlockSpec((tb, 2, w, 2 * cout), lambda b: (b, 0, 0, 0)),
        out_shape=jax.ShapeDtypeStruct((nh, 2, w, 2 * cout), jnp.float32),
        compiler_params=_PAR,
    )(x3, wk, bk)
    # metadata-only reshape: (N*H, 2, W, 2*Cout) -> (N, 2H, 2W, Cout)
    return out.reshape(n, 2 * h, 2 * w, cout)


def conv3x3_concat_stats(sources, w_oihw, mxu_dtype=MXU_DTYPE):
    """Conv2d(k=3, p=1, no bias) over the channel-concat of `sources` + per-image sum/sumsq."""
    n, h, w = sources[0].shape[:3]
    cin = sum(s.shape[-1] for s in sources)
    cout = w_oihw.shape[0]
    m = n * h * w
    wk = jnp.transpose(w_oihw, (2, 3, 1, 0)).reshape(9 * cin, cout).astype(mxu_dtype)
    in_specs = [pl.BlockSpec((1, h, w, s.shape[-1]), lambda i: (i, 0, 0, 0))
                for s in sources]
    in_specs.append(pl.BlockSpec((9 * cin, cout), lambda i: (0, 0)))
    return pl.pallas_call(
        functools.partial(_conv_concat_stats_kernel, n_src=len(sources)),
        grid=(n,),
        in_specs=in_specs,
        out_specs=(pl.BlockSpec((h * w, cout), lambda i: (i, 0)),
                   pl.BlockSpec((1, 1, cout), lambda i: (i, 0, 0)),
                   pl.BlockSpec((1, 1, cout), lambda i: (i, 0, 0))),
        out_shape=(jax.ShapeDtypeStruct((m, cout), jnp.float32),
                   jax.ShapeDtypeStruct((n, 1, cout), jnp.float32),
                   jax.ShapeDtypeStruct((n, 1, cout), jnp.float32)),
        scratch_shapes=[pltpu.VMEM((h + 2, w + 2, cin), mxu_dtype),
                        pltpu.VMEM((h * w, 9 * cin), mxu_dtype)],
        compiler_params=_PAR,
    )(*sources, wk)


def bn_silu_conv3x3_stats(x2d, scale, shift, w_oihw, n, h, w, mxu_dtype=MXU_DTYPE):
    """Fused BN+SiLU (of the previous block) -> Conv2d(k=3,p=1) + per-image sum/sumsq."""
    m, cm = x2d.shape
    cout = w_oihw.shape[0]
    wk = jnp.transpose(w_oihw, (2, 3, 1, 0)).reshape(9 * cm, cout).astype(mxu_dtype)
    return pl.pallas_call(
        _bn_silu_conv_stats_kernel,
        grid=(n,),
        in_specs=[pl.BlockSpec((h * w, cm), lambda i: (i, 0)),
                  pl.BlockSpec((1, cm), lambda i: (0, 0)),
                  pl.BlockSpec((1, cm), lambda i: (0, 0)),
                  pl.BlockSpec((9 * cm, cout), lambda i: (0, 0))],
        out_specs=(pl.BlockSpec((h * w, cout), lambda i: (i, 0)),
                   pl.BlockSpec((1, 1, cout), lambda i: (i, 0, 0)),
                   pl.BlockSpec((1, 1, cout), lambda i: (i, 0, 0))),
        out_shape=(jax.ShapeDtypeStruct((m, cout), jnp.float32),
                   jax.ShapeDtypeStruct((n, 1, cout), jnp.float32),
                   jax.ShapeDtypeStruct((n, 1, cout), jnp.float32)),
        scratch_shapes=[pltpu.VMEM((h + 2, w + 2, cm), mxu_dtype),
                        pltpu.VMEM((h * w, 9 * cm), mxu_dtype)],
        compiler_params=_PAR,
    )(x2d, scale, shift, wk)


def bn_silu(x2d, scale, shift):
    m, c = x2d.shape
    tm = _pick_row_tile(m, 1024)
    return pl.pallas_call(
        _bn_silu_kernel,
        grid=(m // tm,),
        in_specs=[pl.BlockSpec((tm, c), lambda i: (i, 0)),
                  pl.BlockSpec((1, c), lambda i: (0, 0)),
                  pl.BlockSpec((1, c), lambda i: (0, 0))],
        out_specs=pl.BlockSpec((tm, c), lambda i: (i, 0)),
        out_shape=jax.ShapeDtypeStruct((m, c), jnp.float32),
        compiler_params=_PAR,
    )(x2d, scale, shift)


def _bn_affine(sums, sumsqs, count, gamma, beta, eps=1e-5):
    """BatchNorm (train-mode, biased var) folded into per-channel scale/shift."""
    mean = jnp.sum(sums, axis=(0, 1)) / count
    var = jnp.maximum(jnp.sum(sumsqs, axis=(0, 1)) / count - mean * mean, 0.0)
    scale = gamma * lax.rsqrt(var + eps)
    shift = beta - mean * scale
    return scale[None, :].astype(jnp.float32), shift[None, :].astype(jnp.float32)


def decoder_block_2d(x_nchw, skip_nchw, params, mxu_dtype=MXU_DTYPE):
    """DecoderBlock2d.forward. x, skip in NCHW (PyTorch). Returns NCHW."""
    # TODO(synk): a NHWC-native surrounding model would drop these two full-tensor transposes.
    x = jnp.transpose(x_nchw, (0, 2, 3, 1))
    n, h, w, _ = x.shape
    h2, w2 = 2 * h, 2 * w
    cnt = n * h2 * w2

    y1 = conv_transpose_2x2(x, params["trans_w"], params["trans_b"], mxu_dtype)
    sources = [y1]
    if skip_nchw is not None:
        sources.append(jnp.transpose(skip_nchw, (0, 2, 3, 1)))

    raw1, s1, q1 = conv3x3_concat_stats(sources, params["conv1_w"], mxu_dtype)
    scale1, shift1 = _bn_affine(s1, q1, cnt, params["bn1_g"], params["bn1_b"])

    raw2, s2, q2 = bn_silu_conv3x3_stats(raw1, scale1, shift1, params["conv2_w"],
                                         n, h2, w2, mxu_dtype)
    scale2, shift2 = _bn_affine(s2, q2, cnt, params["bn2_g"], params["bn2_b"])

    out2d = bn_silu(raw2, scale2, shift2)
    out = out2d.reshape(n, h2, w2, -1)           # metadata
    return jnp.transpose(out, (0, 3, 1, 2))      # -> NCHW


# ----------------------------------------------------------------------------- pure-JAX reference

def reference(x, skip, p):
    N, Ci, H, W = x.shape
    t = jnp.einsum("ncij,cokl->noikjl", x, p["trans_w"], precision=lax.Precision.HIGHEST)
    t = t.reshape(N, p["trans_w"].shape[1], 2 * H, 2 * W) + p["trans_b"][None, :, None, None]
    xc = jnp.concatenate([t, skip], axis=1)

    def block(xin, w, g, b):
        y = lax.conv_general_dilated(
            xin, w, window_strides=(1, 1), padding=((1, 1), (1, 1)),
            dimension_numbers=("NCHW", "OIHW", "NCHW"),
            precision=lax.Precision.HIGHEST,
        )
        mean = jnp.mean(y, axis=(0, 2, 3), keepdims=True)
        var = jnp.mean(jnp.square(y - mean), axis=(0, 2, 3), keepdims=True)
        y = (y - mean) * lax.rsqrt(var + 1e-5) * g[None, :, None, None] + b[None, :, None, None]
        return y * jax.nn.sigmoid(y)

    xc = block(xc, p["conv1_w"], p["bn1_g"], p["bn1_b"])
    xc = block(xc, p["conv2_w"], p["bn2_g"], p["bn2_b"])
    return xc


# ----------------------------------------------------------------------------- main

if __name__ == "__main__":
    in_ch, skip_ch, out_ch = 8, 8, 16
    N, H, W = 2, 8, 8  # x is the coarse feature map; skip is at 2x resolution

    key = jax.random.PRNGKey(0)
    ks = jax.random.split(key, 10)

    params = {
        "trans_w": 0.1 * jax.random.normal(ks[0], (in_ch, in_ch, 2, 2), jnp.float32),
        "trans_b": 0.1 * jax.random.normal(ks[1], (in_ch,), jnp.float32),
        "conv1_w": 0.1 * jax.random.normal(ks[2], (out_ch, in_ch + skip_ch, 3, 3), jnp.float32),
        "bn1_g": 1.0 + 0.1 * jax.random.normal(ks[3], (out_ch,), jnp.float32),
        "bn1_b": 0.1 * jax.random.normal(ks[4], (out_ch,), jnp.float32),
        "conv2_w": 0.1 * jax.random.normal(ks[5], (out_ch, out_ch, 3, 3), jnp.float32),
        "bn2_g": 1.0 + 0.1 * jax.random.normal(ks[6], (out_ch,), jnp.float32),
        "bn2_b": 0.1 * jax.random.normal(ks[7], (out_ch,), jnp.float32),
    }

    x = jax.random.normal(ks[8], (N, in_ch, H, W), jnp.float32)                   # NCHW
    skip = jax.random.normal(ks[9], (N, skip_ch, 2 * H, 2 * W), jnp.float32)      # NCHW

    out = decoder_block_2d(x, skip, params)
    out = jax.block_until_ready(out)

    ref = reference(x, skip, params)
    assert out.shape == (N, out_ch, 2 * H, 2 * W), out.shape
    assert jnp.allclose(out, ref, rtol=3e-3, atol=3e-3), float(jnp.max(jnp.abs(out - ref)))

    print("KERNEL_OK")
</pallas_src>

<mosaic_0001>
module attributes {stable_mosaic.version = 11 : i64} {
  func.func @_conv_transpose_kernel(%arg0: i32, %arg1: memref<16x8x8xf32, #tpu.memory_space<vmem>>, %arg2: memref<2x8x16xf32, #tpu.memory_space<vmem>>, %arg3: memref<2x1x16xf32, #tpu.memory_space<vmem>>, %arg4: memref<16x2x8x16xf32, #tpu.memory_space<vmem>>) attributes {dimension_semantics = [#tpu.dimension_semantics<parallel>], iteration_bounds = array<i64: 1>, scalar_prefetch = 0 : i64, scratch_operands = 0 : i64, tpu.core_type = #tpu.core_type<tc>, window_params = [{transform_indices = @transform_0, window_bounds = array<i64: 16, 8, 8>}, {pipeline_mode = #tpu.pipeline_mode<synchronous>, transform_indices = @transform_1, window_bounds = array<i64: 2, 8, 16>}, {pipeline_mode = #tpu.pipeline_mode<synchronous>, transform_indices = @transform_2, window_bounds = array<i64: 2, 1, 16>}, {transform_indices = @transform_3, window_bounds = array<i64: 16, 2, 8, 16>}]} {
    %c0 = arith.constant 0 : index
    %c0_0 = arith.constant 0 : index
    %c0_1 = arith.constant 0 : index
    %0 = vector.load %arg1[%c0, %c0_0, %c0_1] : memref<16x8x8xf32, #tpu.memory_space<vmem>>, vector<16x8x8xf32>
    %1 = vector.shape_cast %0 : vector<16x8x8xf32> to vector<128x8xf32>
    %c0_2 = arith.constant 0 : index
    %c0_3 = arith.constant 0 : index
    %c0_4 = arith.constant 0 : index
    %2 = vector.load %arg2[%c0_2, %c0_3, %c0_4] : memref<2x8x16xf32, #tpu.memory_space<vmem>>, vector<1x8x16xf32>
    %3 = vector.shape_cast %2 : vector<1x8x16xf32> to vector<8x16xf32>
    %cst = arith.constant dense<0.000000e+00> : vector<128x16xf32>
    %4 = tpu.matmul %1, %3, %cst {dimension_numbers = #tpu.dot_dimension_numbers<[1], [0], [0], [1], [0, 0, 1, 1], [], []>} : vector<128x8xf32>, vector<8x16xf32>, vector<128x16xf32> -> vector<128x16xf32>
    %c0_5 = arith.constant 0 : index
    %c0_6 = arith.constant 0 : index
    %c0_7 = arith.constant 0 : index
    %5 = vector.load %arg3[%c0_5, %c0_6, %c0_7] : memref<2x1x16xf32, #tpu.memory_space<vmem>>, vector<1x1x16xf32>
    %6 = vector.shape_cast %5 : vector<1x1x16xf32> to vector<1x16xf32>
    %7 = vector.broadcast %6 : vector<1x16xf32> to vector<128x16xf32>
    %8 = arith.addf %4, %7 : vector<128x16xf32>
    %9 = vector.shape_cast %8 : vector<128x16xf32> to vector<16x1x8x16xf32>
    %c0_8 = arith.constant 0 : index
    %c0_9 = arith.constant 0 : index
    %c0_10 = arith.constant 0 : index
    %c0_11 = arith.constant 0 : index
    %10 = vector.load %arg4[%c0_8, %c0_9, %c0_10, %c0_11] : memref<16x2x8x16xf32, #tpu.memory_space<vmem>>, vector<16x1x8x16xf32>
    tpu.vector_store %arg4[%c0_8, %c0_9, %c0_10, %c0_11], %9 {strides = array<i32>} : memref<16x2x8x16xf32, #tpu.memory_space<vmem>>, vector<16x1x8x16xf32>,
    %c1 = arith.constant 1 : index
    %c0_12 = arith.constant 0 : index
    %c0_13 = arith.constant 0 : index
    %11 = vector.load %arg2[%c1, %c0_12, %c0_13] : memref<2x8x16xf32, #tpu.memory_space<vmem>>, vector<1x8x16xf32>
    %12 = vector.shape_cast %11 : vector<1x8x16xf32> to vector<8x16xf32>
    %cst_14 = arith.constant dense<0.000000e+00> : vector<128x16xf32>
    %13 = tpu.matmul %1, %12, %cst_14 {dimension_numbers = #tpu.dot_dimension_numbers<[1], [0], [0], [1], [0, 0, 1, 1], [], []>} : vector<128x8xf32>, vector<8x16xf32>, vector<128x16xf32> -> vector<128x16xf32>
    %c1_15 = arith.constant 1 : index
    %c0_16 = arith.constant 0 : index
    %c0_17 = arith.constant 0 : index
    %14 = vector.load %arg3[%c1_15, %c0_16, %c0_17] : memref<2x1x16xf32, #tpu.memory_space<vmem>>, vector<1x1x16xf32>
    %15 = vector.shape_cast %14 : vector<1x1x16xf32> to vector<1x16xf32>
    %16 = vector.broadcast %15 : vector<1x16xf32> to vector<128x16xf32>
    %17 = arith.addf %13, %16 : vector<128x16xf32>
    %18 = vector.shape_cast %17 : vector<128x16xf32> to vector<16x1x8x16xf32>
    %c0_18 = arith.constant 0 : index
    %c1_19 = arith.constant 1 : index
    %c0_20 = arith.constant 0 : index
    %c0_21 = arith.constant 0 : index
    %19 = vector.load %arg4[%c0_18, %c1_19, %c0_20, %c0_21] : memref<16x2x8x16xf32, #tpu.memory_space<vmem>>, vector<16x1x8x16xf32>
    tpu.vector_store %arg4[%c0_18, %c1_19, %c0_20, %c0_21], %18 {strides = array<i32>} : memref<16x2x8x16xf32, #tpu.memory_space<vmem>>, vector<16x1x8x16xf32>,
    return
  }
  func.func @transform_0(%arg0: i32) -> (i32, i32, i32) {
    %c0_i32 = arith.constant 0 : i32
    %c0_i32_0 = arith.constant 0 : i32
    %c0_i32_1 = arith.constant 0 : i32
    return %arg0, %c0_i32, %c0_i32_0 : i32, i32, i32
  }
  func.func @transform_1(%arg0: i32) -> (i32, i32, i32) {
    %c0_i32 = arith.constant 0 : i32
    %c0_i32_0 = arith.constant 0 : i32
    %c0_i32_1 = arith.constant 0 : i32
    %c0_i32_2 = arith.constant 0 : i32
    return %c0_i32, %c0_i32_0, %c0_i32_1 : i32, i32, i32
  }
  func.func @transform_2(%arg0: i32) -> (i32, i32, i32) {
    %c0_i32 = arith.constant 0 : i32
    %c0_i32_0 = arith.constant 0 : i32
    %c0_i32_1 = arith.constant 0 : i32
    %c0_i32_2 = arith.constant 0 : i32
    return %c0_i32, %c0_i32_0, %c0_i32_1 : i32, i32, i32
  }
  func.func @transform_3(%arg0: i32) -> (i32, i32, i32, i32) {
    %c0_i32 = arith.constant 0 : i32
    %c0_i32_0 = arith.constant 0 : i32
    %c0_i32_1 = arith.constant 0 : i32
    %c0_i32_2 = arith.constant 0 : i32
    return %arg0, %c0_i32, %c0_i32_0, %c0_i32_1 : i32, i32, i32, i32
  }
}

</mosaic_0001>

<bundles_post_ra>
// kernel: tpu_custom_call.1
= control target key start
LH: loop header
LB: loop body
LE: loop exit
PB: predicated region body
PF: predicated region fallthrough
CT: control target
= control target key end

     0   :  { %vm39_vm0 = vcmask 64512   ;;  %s771_s0 = inlined_call_operand.vmem [shape: f32[16,8,8], index: 0, kind: input, shape index: {}]   ;;  %s772_s1 = inlined_call_operand.vmem [shape: f32[2,8,16], index: 1, kind: input, shape index: {}]   ;;  %s773_s2 = inlined_call_operand.vmem [shape: f32[2,1,16], index: 2, kind: input, shape index: {}]   ;;  %s774_s3 = inlined_call_operand.hbm [shape: f32[16,2,8,16], index: 3, kind: output, shape index: {}]  }
   0x1   :  { %v31_v0 = vld [vmem:[%s772_s1] sm:$0xff]  ;;  %v455_v1 = vld [vmem:[%s772_s1 + $0x8] sm:$0xff]  ;;  %v17_v4 = vld [vmem:[%s771_s0 + $0x10] sm:$0xff] }
   0x2   :  { %v15_v2 = vld [vmem:[%s771_s0] sm:$0xff]  ;;  %508 = vmatprep.subr.mxu0 %v31_v0  ;;  %534 = vmatprep.subr.mxu1 %v455_v1  ;;  %v16_v3 = vld [vmem:[%s771_s0 + $0x8] sm:$0xff]  ;;  %v18_v5 = vld [vmem:[%s771_s0 + $0x18] sm:$0xff] }
   0x3   :  { %509 = vmatpush3.msra.mxu0 %v31_v0  ;;  %510 = vmatprep.mubr.msk.f32.mxu0 %vm39_vm0, %v15_v2  ;;  %v19_v6 = vld [vmem:[%s771_s0 + $0x20] sm:$0xff] }
   0x4   :  { %535 = vmatpush3.msra.mxu1 %v455_v1  ;;  %536 = vmatprep.mubr.msk.f32.mxu1 %vm39_vm0, %v15_v2 }
   0x5   :  { %511 = vmatmul.mubr.msk.f32.vlgmr.msra.gmra.mxu0 %vm39_vm0, %v16_v3  ;;  %537 = vmatmul.mubr.msk.f32.vlgmr.msra.gmra.mxu1 %vm39_vm0, %v16_v3 }
   0x6   :  { %513 = vmatprep.mubr.msk.f32.mxu0 %vm39_vm0, %v17_v4  ;;  %539 = vmatprep.mubr.msk.f32.mxu1 %vm39_vm0, %v17_v4 }
   0x7   :  { %8 = vsyncpa [#allocation3], 0  ;;  %v20_v7 = vld [vmem:[%s771_s0 + $0x28] sm:$0xff]  ;;  %v21_v8 = vld [vmem:[%s771_s0 + $0x30] sm:$0xff]  ;;  %vm233_vm1 = vcmask 130048  }
   0x8   :  { %v22_v9 = vld [vmem:[%s771_s0 + $0x38] sm:$0xff]  ;;  %v23_v10 = vld [vmem:[%s771_s0 + $0x40] sm:$0xff]  ;;  %v24_v11 = vld [vmem:[%s771_s0 + $0x48] sm:$0xff] }
   0x9   :  { %514 = vmatmul.mubr.msk.f32.gmra.mxu0 %vm39_vm0, %v18_v5  ;;  %540 = vmatmul.mubr.msk.f32.gmra.mxu1 %vm39_vm0, %v18_v5  ;;  %v25_v12 = vld [vmem:[%s771_s0 + $0x50] sm:$0xff]  ;;  %v26_v13 = vld [vmem:[%s771_s0 + $0x58] sm:$0xff]  ;;  %v27_v14 = vld [vmem:[%s771_s0 + $0x60] sm:$0xff] }
   0xa   :  { %516 = vmatprep.mubr.msk.f32.mxu0 %vm39_vm0, %v19_v6  ;;  %542 = vmatprep.mubr.msk.f32.mxu1 %vm39_vm0, %v19_v6  ;;  %v28_v15 = vld [vmem:[%s771_s0 + $0x68] sm:$0xff]  ;;  %v29_v16 = vld [vmem:[%s771_s0 + $0x70] sm:$0xff]  ;;  %v30_v17 = vld [vmem:[%s771_s0 + $0x78] sm:$0xff]  ;;  %s585_s0 = smov [#allocation2]  }
   0xb   :  { %v697_v18 = vld [vmem:[%s773_s2] ss:$0 sm:$0xff]  ;;  %v702_v19 = vld [vmem:[%s773_s2 + $0x1] ss:$0 sm:$0xff]  ;;  %s427_s2 = sshll.u32 %s585_s0, 4  ;;  %s428_s2 = int_to_ptr.vmem [resolvable:$true] %s427_s2 }
   0xc   :  { %s563_s23 = scalar_lea.vmem %s428_s2, 4096  ;;  %p568_p1 = scmp.lt.s32.totalorder %s428_s2, %s428_s2 }
   0xd   :  { %517 = vmatmul.mubr.msk.f32.gmra.mxu0 %vm39_vm0, %v20_v7  ;;  %543 = vmatmul.mubr.msk.f32.gmra.mxu1 %vm39_vm0, %v20_v7  ;;  %p564_p0 = scmp.ne.s32.totalorder %s428_s2, %s563_s23  ;;  %p569_p2 = scmp.lt.s32.totalorder %s563_s23, %s563_s23 }
   0xe   :  { %519 = vmatprep.mubr.msk.f32.mxu0 %vm39_vm0, %v21_v8  ;;  %545 = vmatprep.mubr.msk.f32.mxu1 %vm39_vm0, %v21_v8 }
   0xf   :  { %p570_p3 = por %p569_p2, %p568_p1 }
  0x11   :  { %520 = vmatmul.mubr.msk.f32.gmra.mxu0 %vm39_vm0, %v22_v9  ;;  %546 = vmatmul.mubr.msk.f32.gmra.mxu1 %vm39_vm0, %v22_v9  ;;  %p571_p4 = pnand %p570_p3, %p564_p0 }
  0x12   :  { %522 = vmatprep.mubr.msk.f32.mxu0 %vm39_vm0, %v23_v10  ;;  %548 = vmatprep.mubr.msk.f32.mxu1 %vm39_vm0, %v23_v10 }
  0x15   :  { %523 = vmatmul.mubr.msk.f32.gmra.mxu0 %vm39_vm0, %v24_v11  ;;  %549 = vmatmul.mubr.msk.f32.gmra.mxu1 %vm39_vm0, %v24_v11 }
  0x16   :  { %525 = vmatprep.mubr.msk.f32.mxu0 %vm39_vm0, %v25_v12  ;;  %551 = vmatprep.mubr.msk.f32.mxu1 %vm39_vm0, %v25_v12 }
  0x19   :  { %526 = vmatmul.mubr.msk.f32.gmra.mxu0 %vm39_vm0, %v26_v13  ;;  %552 = vmatmul.mubr.msk.f32.gmra.mxu1 %vm39_vm0, %v26_v13 }
  0x1a   :  { %528 = vmatprep.mubr.msk.f32.mxu0 %vm39_vm0, %v27_v14  ;;  %554 = vmatprep.mubr.msk.f32.mxu1 %vm39_vm0, %v27_v14 }
  0x1d   :  { %529 = vmatmul.mubr.msk.f32.gmra.mxu0 %vm39_vm0, %v28_v15  ;;  %555 = vmatmul.mubr.msk.f32.gmra.mxu1 %vm39_vm0, %v28_v15 }
  0x1e   :  { %531 = vmatprep.mubr.msk.f32.mxu0 %vm39_vm0, %v29_v16  ;;  %557 = vmatprep.mubr.msk.f32.mxu1 %vm39_vm0, %v29_v16 }
  0x21   :  { %532 = vmatmul.mubr.msk.f32.gmra.mxu0 %vm39_vm0, %v30_v17  ;;  %558 = vmatmul.mubr.msk.f32.gmra.mxu1 %vm39_vm0, %v30_v17 }
  0xc5   :  { %v512_v20 = vpop.f32.mrf.mxu0  ;;  %v538_v21 = vpop.f32.mrf.mxu1 }
  0xc6   :  { %v160_v22 = vadd.f32 %v512_v20, %v697_v18  ;;  %v332_v23 = vadd.f32 %v538_v21, %v702_v19 }
  0xc7   :  { %v154_v24 = vpop.f32.mrf.mxu0  ;;  %v326_v25 = vpop.f32.mrf.mxu1 }
  0xc8   :  { %235 = vst.msk [vmem:[#allocation2 + $0x10] sm:$0xff] %vm233_vm1, %v160_v22  ;;  %407 = vst.msk [vmem:[#allocation2 + $0x18] sm:$0xff] %vm233_vm1, %v332_v23  ;;  %v155_v26 = vadd.f32 %v697_v18, %v154_v24  ;;  %v327_v27 = vadd.f32 %v702_v19, %v326_v25 }
  0xc9   :  { %v515_v28 = vpop.f32.mrf.mxu0  ;;  %v541_v29 = vpop.f32.mrf.mxu1 }
  0xca   :  { %234 = vst.msk [vmem:[#allocation2] sm:$0xff] %vm233_vm1, %v155_v26  ;;  %406 = vst.msk [vmem:[#allocation2 + $0x8] sm:$0xff] %vm233_vm1, %v327_v27  ;;  %v170_v30 = vadd.f32 %v515_v28, %v697_v18  ;;  %v342_v31 = vadd.f32 %v541_v29, %v702_v19 }
  0xcb   :  { %v164_v32 = vpop.f32.mrf.mxu0  ;;  %v336_v33 = vpop.f32.mrf.mxu1 }
  0xcc   :  { %237 = vst.msk [vmem:[#allocation2 + $0x30] sm:$0xff] %vm233_vm1, %v170_v30  ;;  %409 = vst.msk [vmem:[#allocation2 + $0x38] sm:$0xff] %vm233_vm1, %v342_v31  ;;  %v165_v34 = vadd.f32 %v697_v18, %v164_v32  ;;  %v337_v35 = vadd.f32 %v702_v19, %v336_v33 }
  0xcd   :  { %v518_v36 = vpop.f32.mrf.mxu0  ;;  %v544_v37 = vpop.f32.mrf.mxu1 }
  0xce   :  { %236 = vst.msk [vmem:[#allocation2 + $0x20] sm:$0xff] %vm233_vm1, %v165_v34  ;;  %408 = vst.msk [vmem:[#allocation2 + $0x28] sm:$0xff] %vm233_vm1, %v337_v35  ;;  %v180_v38 = vadd.f32 %v518_v36, %v697_v18  ;;  %v352_v39 = vadd.f32 %v544_v37, %v702_v19 }
  0xcf   :  { %v174_v40 = vpop.f32.mrf.mxu0  ;;  %v346_v41 = vpop.f32.mrf.mxu1 }
  0xd0   :  { %239 = vst.msk [vmem:[#allocation2 + $0x50] sm:$0xff] %vm233_vm1, %v180_v38  ;;  %411 = vst.msk [vmem:[#allocation2 + $0x58] sm:$0xff] %vm233_vm1, %v352_v39  ;;  %v175_v42 = vadd.f32 %v697_v18, %v174_v40  ;;  %v347_v43 = vadd.f32 %v702_v19, %v346_v41 }
  0xd1   :  { %v521_v44 = vpop.f32.mrf.mxu0  ;;  %v547_v45 = vpop.f32.mrf.mxu1 }
  0xd2   :  { %238 = vst.msk [vmem:[#allocation2 + $0x40] sm:$0xff] %vm233_vm1, %v175_v42  ;;  %410 = vst.msk [vmem:[#allocation2 + $0x48] sm:$0xff] %vm233_vm1, %v347_v43  ;;  %v190_v46 = vadd.f32 %v521_v44, %v697_v18  ;;  %v362_v47 = vadd.f32 %v547_v45, %v702_v19 }
  0xd3   :  { %v184_v48 = vpop.f32.mrf.mxu0  ;;  %v356_v49 = vpop.f32.mrf.mxu1 }
  0xd4   :  { %241 = vst.msk [vmem:[#allocation2 + $0x70] sm:$0xff] %vm233_vm1, %v190_v46  ;;  %413 = vst.msk [vmem:[#allocation2 + $0x78] sm:$0xff] %vm233_vm1, %v362_v47  ;;  %v185_v50 = vadd.f32 %v697_v18, %v184_v48  ;;  %v357_v51 = vadd.f32 %v702_v19, %v356_v49 }
  0xd5   :  { %v524_v52 = vpop.f32.mrf.mxu0  ;;  %v550_v53 = vpop.f32.mrf.mxu1 }
  0xd6   :  { %240 = vst.msk [vmem:[#allocation2 + $0x60] sm:$0xff] %vm233_vm1, %v185_v50  ;;  %412 = vst.msk [vmem:[#allocation2 + $0x68] sm:$0xff] %vm233_vm1, %v357_v51  ;;  %v200_v54 = vadd.f32 %v524_v52, %v697_v18  ;;  %v372_v55 = vadd.f32 %v550_v53, %v702_v19 }
  0xd7   :  { %v194_v56 = vpop.f32.mrf.mxu0  ;;  %v366_v57 = vpop.f32.mrf.mxu1 }
  0xd8   :  { %243 = vst.msk [vmem:[#allocation2 + $0x90] sm:$0xff] %vm233_vm1, %v200_v54  ;;  %415 = vst.msk [vmem:[#allocation2 + $0x98] sm:$0xff] %vm233_vm1, %v372_v55  ;;  %v195_v58 = vadd.f32 %v697_v18, %v194_v56  ;;  %v367_v59 = vadd.f32 %v702_v19, %v366_v57 }
  0xd9   :  { %v527_v60 = vpop.f32.mrf.mxu0  ;;  %v553_v61 = vpop.f32.mrf.mxu1 }
  0xda   :  { %242 = vst.msk [vmem:[#allocation2 + $0x80] sm:$0xff] %vm233_vm1, %v195_v58  ;;  %414 = vst.msk [vmem:[#allocation2 + $0x88] sm:$0xff] %vm233_vm1, %v367_v59  ;;  %v210_v62 = vadd.f32 %v527_v60, %v697_v18  ;;  %v382_v63 = vadd.f32 %v553_v61, %v702_v19 }
  0xdb   :  { %v204_v0 = vpop.f32.mrf.mxu0  ;;  %v376_v1 = vpop.f32.mrf.mxu1 }
  0xdc   :  { %245 = vst.msk [vmem:[#allocation2 + $0xb0] sm:$0xff] %vm233_vm1, %v210_v62  ;;  %417 = vst.msk [vmem:[#allocation2 + $0xb8] sm:$0xff] %vm233_vm1, %v382_v63  ;;  %v205_v2 = vadd.f32 %v697_v18, %v204_v0  ;;  %v377_v3 = vadd.f32 %v702_v19, %v376_v1 }
  0xdd   :  { %v530_v4 = vpop.f32.mrf.mxu0  ;;  %v556_v5 = vpop.f32.mrf.mxu1 }
  0xde   :  { %244 = vst.msk [vmem:[#allocation2 + $0xa0] sm:$0xff] %vm233_vm1, %v205_v2  ;;  %416 = vst.msk [vmem:[#allocation2 + $0xa8] sm:$0xff] %vm233_vm1, %v377_v3  ;;  %v220_v6 = vadd.f32 %v530_v4, %v697_v18  ;;  %v392_v7 = vadd.f32 %v556_v5, %v702_v19 }
  0xdf   :  { %v214_v8 = vpop.f32.mrf.mxu0  ;;  %v386_v9 = vpop.f32.mrf.mxu1 }
  0xe0   :  { %247 = vst.msk [vmem:[#allocation2 + $0xd0] sm:$0xff] %vm233_vm1, %v220_v6  ;;  %419 = vst.msk [vmem:[#allocation2 + $0xd8] sm:$0xff] %vm233_vm1, %v392_v7  ;;  %v215_v10 = vadd.f32 %v697_v18, %v214_v8  ;;  %v387_v11 = vadd.f32 %v702_v19, %v386_v9 }
  0xe1   :  { %v533_v12 = vpop.f32.mrf.mxu0  ;;  %v559_v13 = vpop.f32.mrf.mxu1 }
  0xe2   :  { %246 = vst.msk [vmem:[#allocation2 + $0xc0] sm:$0xff] %vm233_vm1, %v215_v10  ;;  %418 = vst.msk [vmem:[#allocation2 + $0xc8] sm:$0xff] %vm233_vm1, %v387_v11  ;;  %v230_v14 = vadd.f32 %v533_v12, %v697_v18  ;;  %v402_v15 = vadd.f32 %v559_v13, %v702_v19 }
  0xe3   :  { %v224_v16 = vpop.f32.mrf.mxu0  ;;  %v396_v17 = vpop.f32.mrf.mxu1 }
  0xe4   :  { %249 = vst.msk [vmem:[#allocation2 + $0xf0] sm:$0xff] %vm233_vm1, %v230_v14  ;;  %421 = vst.msk [vmem:[#allocation2 + $0xf8] sm:$0xff] %vm233_vm1, %v402_v15  ;;  %v225_v20 = vadd.f32 %v697_v18, %v224_v16  ;;  %v397_v21 = vadd.f32 %v702_v19, %v396_v17 }
  0xe6   :  { %248 = vst.msk [vmem:[#allocation2 + $0xe0] sm:$0xff] %vm233_vm1, %v225_v20  ;;  %420 = vst.msk [vmem:[#allocation2 + $0xe8] sm:$0xff] %vm233_vm1, %v397_v21 }
  0xe7   :  { %574 = shalt.err (!%p571_p4)
}
  0xe8   :  { %s586_s24 = smov 128   ;;  %s587_s25 = smov 8  }
  0xe9   :  { %433 = dma.vmem_to_hbm [thread:$0]  %s428_s2, 4096, %s774_s3, [#allocation3], %s586_s24, %s586_s24, %s587_s25  }
  0xea   :  { %583 = dma.done.wait [#allocation3], 4096  }
  0xeb   :  { %584 = vsyncadd [#allocation3], 4294963200 }
  0xec   :  { %437 = vsyncpa [#allocation3], 1 }

</bundles_post_ra>
